<compile_context>
chip_gen: v7x
topology: tpu7x:2x2x1
jax: 0.10.0
libtpu: 0.0.40
codegen_flags: <defaults>
</compile_context>

<pallas_src>
import functools

import jax
import jax.numpy as jnp
from jax import lax
from jax.experimental import pallas as pl
from jax.experimental.pallas import tpu as pltpu

_MIB = 1024 * 1024


def _round_up(x, m):
    return ((x + m - 1) // m) * m


def _vmem_capacity_bytes():
    try:
        return int(pltpu.get_tpu_info().vmem_capacity_bytes)
    except Exception:
        return 64 * _MIB  # v7x per-core VMEM — the smallest current generation


def _plan_tiling(batch, dim, itemsize, force_td=None):
    """Pick (td, n_parallel, padded_D, vmem_limit_bytes), VMEM-budget aware.

    Budget model (per the Pallas pipeline): 2 inputs x 2 pipeline buffers of
    (B, td) at the input itemsize, plus 2 Gram output blocks of (B, B) f32
    (up to 2 buffers each), plus headroom, inside ~65% of physical VMEM.
    """
    d128 = _round_up(dim, 128)
    cap = _vmem_capacity_bytes()
    gram_bytes = 2 * 2 * batch * batch * 4
    headroom = 2 * _MIB
    budget = int(cap * 0.65)
    avail = max(budget - gram_bytes - headroom, 4 * batch * itemsize * 128)
    td_cap = (avail // (4 * batch * itemsize)) // 128 * 128
    td_cap = max(128, min(td_cap, 2048, d128))

    if force_td is not None:
        assert force_td % 128 == 0, "block_d must be a multiple of 128"
        td = force_td
        nc = 2 if d128 >= 2 * td else 1
        d_pad = _round_up(d128, nc * td)
    else:
        nc = 2 if d128 >= 256 else 1  # need >= 2 chunks to feed 2 TensorCores
        best = None
        for cand in range(128, td_cap + 1, 128):
            d_pad_c = _round_up(d128, nc * cand)
            key = (d_pad_c, -cand)  # least zero-padding first, then biggest tile
            if best is None or key < best[0]:
                best = (key, cand, d_pad_c)
        _, td, d_pad = best

    needed = (2 * 2 * batch * td * itemsize) + gram_bytes + headroom
    vmem_limit = int(min(cap - 2 * _MIB, max(2 * needed, 32 * _MIB)))
    return td, nc, d_pad, vmem_limit


def _gram_kernel(q_ref, k_ref, gq_ref, gk_ref, *, matmul_dtype):
    """Stream D chunks; accumulate partial Q@Q^T / K@K^T in the output blocks.

    Grid = (n_parallel, d_chunks_per_slice).  Axis 0 is "parallel" (megacore
    split of the D range); axis 1 is the "arbitrary" reduction over chunks.
    The (B,B) output block is resident across axis 1 and owned per-slice, so
    no scratch is shared across the parallel axis.
    """
    d_idx = pl.program_id(1)

    @pl.when(d_idx == 0)
    def _init():
        gq_ref[...] = jnp.zeros_like(gq_ref)
        gk_ref[...] = jnp.zeros_like(gk_ref)

    q = q_ref[...].astype(matmul_dtype)
    k = k_ref[...].astype(matmul_dtype)
    contract = (((1,), (1,)), ((), ()))  # contract the feature dim of both sides
    gq_ref[...] += lax.dot_general(q, q, contract,
                                   preferred_element_type=jnp.float32)
    gk_ref[...] += lax.dot_general(k, k, contract,
                                   preferred_element_type=jnp.float32)


def _loss_epilogue_kernel(gq_ref, gk_ref, out_ref, *, batch, num_partials,
                          approx_recip):
    """One-shot epilogue: combine partial Grams, normalize, off-diagonal MSE."""
    b = batch

    def combine(ref):
        g = ref[0]
        for c in range(1, num_partials):
            g = g + ref[c]
        return g

    # Single boolean diagonal mask, reused for diag extraction and off-diag
    # masking (no separate rows/cols int32 matrices kept live).
    is_diag = (lax.broadcasted_iota(jnp.int32, (b, b), 0)
               == lax.broadcasted_iota(jnp.int32, (b, b), 1))

    def cosine_from_gram(gram):
        # Per-row sum of squares == diagonal of the Gram matrix (replaces the
        # per-chunk square+reduce that used to run in the streaming kernel).
        ss_c = jnp.sum(jnp.where(is_diag, gram, 0.0), axis=1, keepdims=True)  # (B,1)
        ss_r = jnp.sum(jnp.where(is_diag, gram, 0.0), axis=0, keepdims=True)  # (1,B)

        def scales(ss):
            norm = jnp.sqrt(ss)                               # ||x_i||
            # Normalize() scale: 1 / (||x|| + 1e-7)  (EUP reciprocal)
            r = pl.reciprocal(norm + 1e-7, approx=approx_recip)
            # ||x/(||x||+1e-7)|| computed analytically; clamp away from 0 so a
            # zero-norm row cannot produce NaN through the approx reciprocal.
            a = jnp.maximum(norm * r, 1e-30)
            ra = pl.reciprocal(a, approx=approx_recip)
            return r, ra

        r_c, ra_c = scales(ss_c)
        r_r, ra_r = scales(ss_r)
        # torch cosine eps: 1 / max(a_i*a_j, 1e-8) == min((1/a_i)*(1/a_j), 1e8)
        inv_den = jnp.minimum(ra_c * ra_r, 1e8)
        # (x_i . x_j) * r_i * r_j == dot of the normalized rows
        return gram * r_c * r_r * inv_den

    qsim = cosine_from_gram(combine(gq_ref))
    ksim = cosine_from_gram(combine(gk_ref))

    diff = qsim - ksim
    sq_err = jnp.where(is_diag, 0.0, diff * diff)
    tot = jnp.sum(sq_err, axis=1, keepdims=True)
    tot = jnp.sum(tot, axis=0, keepdims=True)                 # (1, 1)
    # Scalar is written exactly once (one-shot kernel), so a (1,1) VMEM block
    # costs a single writeback; the SMEM-scalar-output variant buys nothing.
    out_ref[...] = tot * (1.0 / float(b * (b - 1)))


def const_loss(feat_q, feat_k, *, precise=False, block_d=None):
    """Pallas TPU ConstLoss.forward. Returns a scalar f32.

    precise=False (default): bf16 MXU operands + approximate EUP reciprocals.
    precise=True           : f32 MXU + exact reciprocals (matches the f32
                             reference to ~1e-6).
    """
    assert feat_q.shape == feat_k.shape and feat_q.ndim == 2
    batch, dim = feat_q.shape
    assert batch >= 2, "ConstLoss needs at least 2 samples (i != j pairs)"

    matmul_dtype = jnp.float32 if precise else jnp.bfloat16
    approx_recip = not precise
    itemsize = jnp.dtype(feat_q.dtype).itemsize

    td, nc, d_pad, vmem_limit = _plan_tiling(batch, dim, itemsize,
                                             force_td=block_d)

    # Zero-pad the feature dim so tiles are 128-aligned and the chunks split
    # evenly across the parallel axis; zero columns change neither the Gram
    # matrices nor the row norms.  (No-op copy when dim is already aligned.)
    if d_pad != dim:
        pad = ((0, 0), (0, d_pad - dim))
        feat_q = jnp.pad(feat_q, pad)
        feat_k = jnp.pad(feat_k, pad)

    ndpc = d_pad // td // nc            # D chunks handled by each parallel slice
    in_map = lambda c, d: (0, c * ndpc + d)
    gram_map = lambda c, d: (c, 0, 0)   # output block owned by slice c, resident over d

    gram_q, gram_k = pl.pallas_call(
        functools.partial(_gram_kernel, matmul_dtype=matmul_dtype),
        grid=(nc, ndpc),
        in_specs=[
            pl.BlockSpec((batch, td), in_map),
            pl.BlockSpec((batch, td), in_map),
        ],
        out_specs=(
            pl.BlockSpec((None, batch, batch), gram_map),
            pl.BlockSpec((None, batch, batch), gram_map),
        ),
        out_shape=(
            jax.ShapeDtypeStruct((nc, batch, batch), jnp.float32),
            jax.ShapeDtypeStruct((nc, batch, batch), jnp.float32),
        ),
        compiler_params=pltpu.CompilerParams(
            dimension_semantics=("parallel", "arbitrary"),
            vmem_limit_bytes=vmem_limit,
        ),
    )(feat_q, feat_k)

    # Tiny one-shot epilogue over the (nc, B, B) partial Grams.
    cap = _vmem_capacity_bytes()
    epi_needed = (2 * nc + 10) * batch * batch * 4 + 2 * _MIB
    epi_limit = int(min(cap - 2 * _MIB, max(epi_needed, 32 * _MIB)))

    out = pl.pallas_call(
        functools.partial(_loss_epilogue_kernel, batch=batch,
                          num_partials=nc, approx_recip=approx_recip),
        in_specs=[
            pl.BlockSpec(memory_space=pltpu.MemorySpace.VMEM),
            pl.BlockSpec(memory_space=pltpu.MemorySpace.VMEM),
        ],
        out_specs=pl.BlockSpec(memory_space=pltpu.MemorySpace.VMEM),
        out_shape=jax.ShapeDtypeStruct((1, 1), jnp.float32),
        compiler_params=pltpu.CompilerParams(vmem_limit_bytes=epi_limit),
    )(gram_q, gram_k)
    return out[0, 0]


def _const_loss_ref(feat_q, feat_k):
    """Pure-JAX reference mirroring the PyTorch module (for verification)."""
    feat_q = feat_q.astype(jnp.float32)
    feat_k = feat_k.astype(jnp.float32)

    def normalize(x):
        n = jnp.sqrt(jnp.sum(x * x, axis=1, keepdims=True))
        return x / (n + 1e-7)

    qn = normalize(feat_q)
    kn = normalize(feat_k)

    def cos_mat(x):
        num = jnp.matmul(x, x.T, precision=jax.lax.Precision.HIGHEST)
        n = jnp.sqrt(jnp.sum(x * x, axis=1, keepdims=True))
        return num / jnp.maximum(n * n.T, 1e-8)

    sq = cos_mat(qn)
    sk = cos_mat(kn)
    b = feat_q.shape[0]
    mask = 1.0 - jnp.eye(b, dtype=jnp.float32)
    return jnp.sum(((sq - sk) ** 2) * mask) / (b * (b - 1))


if __name__ == "__main__":
    key = jax.random.PRNGKey(0)
    kq, kk = jax.random.split(key)

    # Small shapes consistent with the module: (batch, feature_dim)
    B, D = 4, 32
    feat_q = jax.random.normal(kq, (B, D), dtype=jnp.float32)
    feat_k = jax.random.normal(kk, (B, D), dtype=jnp.float32)

    ref = _const_loss_ref(feat_q, feat_k)

    # Fast path: bf16 MXU operands + approximate EUP reciprocals.
    loss_fast = const_loss(feat_q, feat_k)
    jax.block_until_ready(loss_fast)
    assert bool(jnp.isfinite(loss_fast))
    assert jnp.allclose(loss_fast, ref, atol=2e-3, rtol=5e-2), (loss_fast, ref)

    # Precise path: f32 MXU + exact reciprocals -> tight match to reference.
    loss_precise = const_loss(feat_q, feat_k, precise=True)
    jax.block_until_ready(loss_precise)
    assert jnp.allclose(loss_precise, ref, atol=1e-5, rtol=1e-4), (loss_precise, ref)

    # Multi-chunk pipelined path with the parallel D split (grid (2, 2)) and
    # native bf16 inputs fed straight into the Gram matmuls (no wrapper cast).
    D2 = 512
    fq2 = jax.random.normal(kq, (B, D2), dtype=jnp.bfloat16)
    fk2 = jax.random.normal(kk, (B, D2), dtype=jnp.bfloat16)
    loss2 = const_loss(fq2, fk2, block_d=128)
    jax.block_until_ready(loss2)
    ref2 = _const_loss_ref(fq2, fk2)
    assert jnp.allclose(loss2, ref2, atol=2e-3, rtol=5e-2), (loss2, ref2)

    # Unaligned feature dim exercises the wrapper-side zero padding (96 -> 128).
    D3 = 96
    fq3 = jax.random.normal(kq, (B, D3), dtype=jnp.float32)
    fk3 = jax.random.normal(kk, (B, D3), dtype=jnp.float32)
    loss3 = const_loss(fq3, fk3, precise=True)
    jax.block_until_ready(loss3)
    ref3 = _const_loss_ref(fq3, fk3)
    assert jnp.allclose(loss3, ref3, atol=1e-5, rtol=1e-4), (loss3, ref3)

    print("KERNEL_OK")
</pallas_src>

<mosaic_0001>
module attributes {stable_mosaic.version = 11 : i64} {
  func.func @_gram_kernel(%arg0: i32, %arg1: i32, %arg2: memref<4x128xf32, #tpu.memory_space<vmem>>, %arg3: memref<4x128xf32, #tpu.memory_space<vmem>>, %arg4: memref<1x4x4xf32, #tpu.memory_space<vmem>>, %arg5: memref<1x4x4xf32, #tpu.memory_space<vmem>>) attributes {dimension_semantics = [#tpu.dimension_semantics<parallel>, #tpu.dimension_semantics<arbitrary>], iteration_bounds = array<i64: 1, 1>, scalar_prefetch = 0 : i64, scratch_operands = 0 : i64, tpu.core_type = #tpu.core_type<tc>, window_params = [{transform_indices = @transform_0, window_bounds = array<i64: 4, 128>}, {transform_indices = @transform_1, window_bounds = array<i64: 4, 128>}, {transform_indices = @transform_2, window_bounds = array<i64: 1, 4, 4>}, {transform_indices = @transform_3, window_bounds = array<i64: 1, 4, 4>}]} {
    %c0_i32 = arith.constant 0 : i32
    %0 = arith.cmpi eq, %arg1, %c0_i32 : i32
    %1 = arith.extui %0 : i1 to i32
    %c0_i32_0 = arith.constant 0 : i32
    %2 = arith.cmpi ne, %1, %c0_i32_0 : i32
    scf.if %2 {
      %cst_17 = arith.constant 0.000000e+00 : f32
      %21 = vector.broadcast %cst_17 : f32 to vector<4x4xf32>
      %c0_18 = arith.constant 0 : index
      %c0_19 = arith.constant 0 : index
      %c0_20 = arith.constant 0 : index
      %22 = vector.load %arg4[%c0_18, %c0_19, %c0_20] : memref<1x4x4xf32, #tpu.memory_space<vmem>>, vector<1x4x4xf32>
      %23 = vector.shape_cast %22 : vector<1x4x4xf32> to vector<4x4xf32>
      %24 = vector.shape_cast %21 : vector<4x4xf32> to vector<1x4x4xf32>
      tpu.vector_store %arg4[%c0_18, %c0_19, %c0_20], %24 {strides = array<i32>} : memref<1x4x4xf32, #tpu.memory_space<vmem>>, vector<1x4x4xf32>,
      %cst_21 = arith.constant 0.000000e+00 : f32
      %25 = vector.broadcast %cst_21 : f32 to vector<4x4xf32>
      %c0_22 = arith.constant 0 : index
      %c0_23 = arith.constant 0 : index
      %c0_24 = arith.constant 0 : index
      %26 = vector.load %arg5[%c0_22, %c0_23, %c0_24] : memref<1x4x4xf32, #tpu.memory_space<vmem>>, vector<1x4x4xf32>
      %27 = vector.shape_cast %26 : vector<1x4x4xf32> to vector<4x4xf32>
      %28 = vector.shape_cast %25 : vector<4x4xf32> to vector<1x4x4xf32>
      tpu.vector_store %arg5[%c0_22, %c0_23, %c0_24], %28 {strides = array<i32>} : memref<1x4x4xf32, #tpu.memory_space<vmem>>, vector<1x4x4xf32>,
    } else {
    }
    %c0 = arith.constant 0 : index
    %c0_1 = arith.constant 0 : index
    %3 = vector.load %arg2[%c0, %c0_1] : memref<4x128xf32, #tpu.memory_space<vmem>>, vector<4x128xf32>
    %4 = arith.truncf %3 : vector<4x128xf32> to vector<4x128xbf16>
    %c0_2 = arith.constant 0 : index
    %c0_3 = arith.constant 0 : index
    %5 = vector.load %arg3[%c0_2, %c0_3] : memref<4x128xf32, #tpu.memory_space<vmem>>, vector<4x128xf32>
    %6 = arith.truncf %5 : vector<4x128xf32> to vector<4x128xbf16>
    %c0_4 = arith.constant 0 : index
    %c0_5 = arith.constant 0 : index
    %c0_6 = arith.constant 0 : index
    %7 = vector.load %arg4[%c0_4, %c0_5, %c0_6] : memref<1x4x4xf32, #tpu.memory_space<vmem>>, vector<1x4x4xf32>
    %8 = vector.shape_cast %7 : vector<1x4x4xf32> to vector<4x4xf32>
    %cst = arith.constant dense<0.000000e+00> : vector<4x4xf32>
    %9 = tpu.matmul %4, %4, %cst {dimension_numbers = #tpu.dot_dimension_numbers<[1], [1], [0], [0], [0, 0, 1, 0], [], []>} : vector<4x128xbf16>, vector<4x128xbf16>, vector<4x4xf32> -> vector<4x4xf32>
    %10 = arith.addf %8, %9 : vector<4x4xf32>
    %c0_7 = arith.constant 0 : index
    %c0_8 = arith.constant 0 : index
    %c0_9 = arith.constant 0 : index
    %11 = vector.load %arg4[%c0_7, %c0_8, %c0_9] : memref<1x4x4xf32, #tpu.memory_space<vmem>>, vector<1x4x4xf32>
    %12 = vector.shape_cast %11 : vector<1x4x4xf32> to vector<4x4xf32>
    %13 = vector.shape_cast %10 : vector<4x4xf32> to vector<1x4x4xf32>
    tpu.vector_store %arg4[%c0_7, %c0_8, %c0_9], %13 {strides = array<i32>} : memref<1x4x4xf32, #tpu.memory_space<vmem>>, vector<1x4x4xf32>,
    %c0_10 = arith.constant 0 : index
    %c0_11 = arith.constant 0 : index
    %c0_12 = arith.constant 0 : index
    %14 = vector.load %arg5[%c0_10, %c0_11, %c0_12] : memref<1x4x4xf32, #tpu.memory_space<vmem>>, vector<1x4x4xf32>
    %15 = vector.shape_cast %14 : vector<1x4x4xf32> to vector<4x4xf32>
    %cst_13 = arith.constant dense<0.000000e+00> : vector<4x4xf32>
    %16 = tpu.matmul %6, %6, %cst_13 {dimension_numbers = #tpu.dot_dimension_numbers<[1], [1], [0], [0], [0, 0, 1, 0], [], []>} : vector<4x128xbf16>, vector<4x128xbf16>, vector<4x4xf32> -> vector<4x4xf32>
    %17 = arith.addf %15, %16 : vector<4x4xf32>
    %c0_14 = arith.constant 0 : index
    %c0_15 = arith.constant 0 : index
    %c0_16 = arith.constant 0 : index
    %18 = vector.load %arg5[%c0_14, %c0_15, %c0_16] : memref<1x4x4xf32, #tpu.memory_space<vmem>>, vector<1x4x4xf32>
    %19 = vector.shape_cast %18 : vector<1x4x4xf32> to vector<4x4xf32>
    %20 = vector.shape_cast %17 : vector<4x4xf32> to vector<1x4x4xf32>
    tpu.vector_store %arg5[%c0_14, %c0_15, %c0_16], %20 {strides = array<i32>} : memref<1x4x4xf32, #tpu.memory_space<vmem>>, vector<1x4x4xf32>,
    return
  }
  func.func @transform_0(%arg0: i32, %arg1: i32) -> (i32, i32) {
    %c1_i32 = arith.constant 1 : i32
    %0 = arith.muli %arg0, %c1_i32 : i32
    %1 = arith.addi %0, %arg1 : i32
    %c0_i32 = arith.constant 0 : i32
    %c0_i32_0 = arith.constant 0 : i32
    return %c0_i32, %1 : i32, i32
  }
  func.func @transform_1(%arg0: i32, %arg1: i32) -> (i32, i32) {
    %c1_i32 = arith.constant 1 : i32
    %0 = arith.muli %arg0, %c1_i32 : i32
    %1 = arith.addi %0, %arg1 : i32
    %c0_i32 = arith.constant 0 : i32
    %c0_i32_0 = arith.constant 0 : i32
    return %c0_i32, %1 : i32, i32
  }
  func.func @transform_2(%arg0: i32, %arg1: i32) -> (i32, i32, i32) {
    %c0_i32 = arith.constant 0 : i32
    %c0_i32_0 = arith.constant 0 : i32
    %c0_i32_1 = arith.constant 0 : i32
    return %arg0, %c0_i32, %c0_i32_0 : i32, i32, i32
  }
  func.func @transform_3(%arg0: i32, %arg1: i32) -> (i32, i32, i32) {
    %c0_i32 = arith.constant 0 : i32
    %c0_i32_0 = arith.constant 0 : i32
    %c0_i32_1 = arith.constant 0 : i32
    return %arg0, %c0_i32, %c0_i32_0 : i32, i32, i32
  }
}

</mosaic_0001>

<bundles_post_ra>
// kernel: tpu_custom_call.1
= control target key start
LH: loop header
LB: loop body
LE: loop exit
PB: predicated region body
PF: predicated region fallthrough
CT: control target
= control target key end

     0   :  { %9 = vsyncpa [#allocation3], 0  ;;  %s379_s0 = inlined_call_operand.hbm [shape: f32[4,128], index: 0, kind: input, shape index: {}]   ;;  %s380_s1 = inlined_call_operand.hbm [shape: f32[4,128], index: 1, kind: input, shape index: {}]   ;;  %s381_s2 = inlined_call_operand.hbm [shape: f32[1,4,4], index: 2, kind: output, shape index: {0}]   ;;  %s382_s3 = inlined_call_operand.hbm [shape: f32[1,4,4], index: 3, kind: output, shape index: {1}]  }
   0x1   :  { %10 = vsyncpa [#allocation6], 0 }
   0x2   :  { %11 = vsyncpa [#allocation4], 0 }
   0x3   :  { %12 = vsyncpa [#allocation9], 0  ;;  %s294_s12 = smov [#allocation2]   ;;  %s295_s14 = smov [#allocation5]  }
   0x4   :  { %s22_s13 = sshll.u32 %s294_s12, 4  ;;  %s35_s15 = sshll.u32 %s295_s14, 4  ;;  %s23_s13 = int_to_ptr.vmem [resolvable:$true] %s22_s13  ;;  %s36_s15 = int_to_ptr.vmem [resolvable:$true] %s35_s15 }
   0x5   :  { %s198_s18 = scalar_lea.hbm %s379_s0, 64 }
   0x6   :  { %p199_p0 = scmp.ne.s32.totalorder %s379_s0, %s198_s18  ;;  %p202_p1 = scmp.lt.u32.totalorder %s198_s18, %s379_s0 }
   0x8   :  { %p204_p2 = pnand %p202_p1, %p199_p0 }
   0xa   :  { %207 = shalt.err (!%p204_p2)
}
   0xb   :  { %s208_s23 = scalar_lea.vmem %s23_s13, 64  ;;  %p213_p4 = scmp.lt.s32.totalorder %s23_s13, %s23_s13 }
   0xc   :  { %p209_p3 = scmp.ne.s32.totalorder %s23_s13, %s208_s23  ;;  %p214_p5 = scmp.lt.s32.totalorder %s208_s23, %s208_s23 }
   0xe   :  { %p215_p6 = por %p214_p5, %p213_p4 }
  0x10   :  { %p216_p7 = pnand %p215_p6, %p209_p3 }
  0x12   :  { %219 = shalt.err (!%p216_p7)
}
  0x13   :  { %25 = dma.hbm_to_vmem [thread:$0]  %s379_s0, 64, %s23_s13, [#allocation3]  }
  0x14   :  { %s220_s28 = scalar_lea.hbm %s380_s1, 64 }
  0x15   :  { %p221_p8 = scmp.ne.s32.totalorder %s380_s1, %s220_s28  ;;  %p224_p9 = scmp.lt.u32.totalorder %s220_s28, %s380_s1 }
  0x17   :  { %p226_p10 = pnand %p224_p9, %p221_p8 }
  0x19   :  { %229 = shalt.err (!%p226_p10)
}
  0x1a   :  { %s230_s6 = scalar_lea.vmem %s36_s15, 64  ;;  %p235_p12 = scmp.lt.s32.totalorder %s36_s15, %s36_s15 }
  0x1b   :  { %p231_p11 = scmp.ne.s32.totalorder %s36_s15, %s230_s6  ;;  %p236_p13 = scmp.lt.s32.totalorder %s230_s6, %s230_s6 }
  0x1d   :  { %p237_p0 = por %p236_p13, %p235_p12 }
  0x1f   :  { %p238_p1 = pnand %p237_p0, %p231_p11 }
  0x21   :  { %241 = shalt.err (!%p238_p1)
}
  0x22   :  { %38 = dma.hbm_to_vmem [thread:$0]  %s380_s1, 64, %s36_s15, [#allocation6]  }
  0x23   :  { %286 = dma.done.wait [#allocation3], 64  }
  0x24   :  { %287 = vsyncadd [#allocation3], 4294967232 }
  0x25   :  { %288 = dma.done.wait [#allocation6], 64  }
  0x26   :  { %289 = vsyncadd [#allocation6], 4294967232  ;;  %vm52_vm0 = vcmask 27648   ;;  %v296_v0 = vmov 0.0   ;;  %vm297_vm1 = vmmov 0   ;;  %s298_s1 = smov [#allocation7]  }
  0x27   :  { %53 = vst.msk [vmem:[#allocation7] sm:$0xf] %vm52_vm0, %v296_v0  ;;  %54 = vst.msk [vmem:[#allocation8] sm:$0xf] %vm52_vm0, %v296_v0  ;;  %180 = vmatprep.subr.bf16.mxu0 %v296_v0  ;;  %186 = vmatprep.subr.bf16.mxu1 %v296_v0  ;;  %v55_v1 = vld [vmem:[#allocation2] sm:$0xf] }
  0x28   :  { %182 = vmatprep.mubr.msk.bf16.mxu0 %vm297_vm1, %v296_v0  ;;  %188 = vmatprep.mubr.msk.bf16.mxu1 %vm297_vm1, %v296_v0  ;;  %v57_v2 = vld [vmem:[#allocation5] sm:$0xf]  ;;  %v56_v3 = vpack.c.bf16 %v55_v1, %v55_v1  ;;  %s152_s8 = sshll.u32 %s298_s1, 4  ;;  %s299_s9 = smov [#allocation8]   ;;  %s153_s8 = int_to_ptr.vmem [resolvable:$true] %s152_s8 }
  0x29   :  { %v58_v4 = vpack.c.bf16 %v57_v2, %v57_v2  ;;  %s162_s10 = sshll.u32 %s299_s9, 4  ;;  %s242_s11 = scalar_lea.vmem %s153_s8, 64  ;;  %s346_s10 = int_to_ptr.vmem [resolvable:$true] %s162_s10 }
  0x2a   :  { %181 = vmatpush3.bf16.xpose.msra.mxu0 %v56_v3  ;;  %p243_p2 = scmp.ne.s32.totalorder %s153_s8, %s242_s11  ;;  %p247_p3 = scmp.lt.s32.totalorder %s153_s8, %s153_s8 }
  0x2b   :  { %187 = vmatpush3.bf16.xpose.msra.mxu1 %v58_v4  ;;  %p248_p4 = scmp.lt.s32.totalorder %s242_s11, %s242_s11 }
  0x2d   :  { %p249_p5 = por %p248_p4, %p247_p3 }
  0x2e   :  { %v59_v5 = vld [vmem:[#allocation7] sm:$0xf]  ;;  %v103_v6 = vld [vmem:[#allocation8] sm:$0xf] }
  0x2f   :  { %p250_p6 = pnand %p249_p5, %p243_p2 }
  0x31   :  { %183 = vmatmul.mubr.bf16.vlgmr.msra.gmra.mrb[0].mxu0 %v56_v3 }
  0x32   :  { %189 = vmatmul.mubr.bf16.vlgmr.msra.gmra.mrb[0].mxu1 %v58_v4 }
 0x104   :  { %v94_v7 = vpop.f32.mrb[0].mxu0 }
 0x105   :  { %v138_v8 = vpop.f32.mrb[0].mxu1  ;;  %v100_v9 = vadd.f32 %v94_v7, %v59_v5  ;;  %v184_v11 = vpop.f32.mrb[1].mxu0 }
 0x106   :  { %v144_v10 = vadd.f32 %v138_v8, %v103_v6  ;;  %v190_v12 = vpop.f32.mrb[1].mxu1  ;;  %v97_v13 = vpop.f32.mrb[2].mxu0 }
 0x107   :  { %v141_v14 = vpop.f32.mrb[2].mxu1  ;;  %102 = vst.msk [vmem:[#allocation7] sm:$0xf] %vm52_vm0, %v100_v9  ;;  %v185_v15 = vpop.f32.mrb[3].mxu0 }
 0x108   :  { %145 = vst.msk [vmem:[#allocation8] sm:$0xf] %vm52_vm0, %v144_v10  ;;  %v191_v16 = vpop.f32.mrb[3].mxu1 }
 0x109   :  { %253 = shalt.err (!%p250_p6)
}
 0x10a   :  { %s254_s14 = scalar_lea.hbm %s381_s2, 64 }
 0x10b   :  { %p255_p7 = scmp.ne.s32.totalorder %s381_s2, %s254_s14  ;;  %p258_p8 = scmp.lt.u32.totalorder %s254_s14, %s381_s2 }
 0x10d   :  { %p260_p9 = pnand %p258_p8, %p255_p7 }
 0x10f   :  { %263 = shalt.err (!%p260_p9)
}
 0x110   :  { %155 = dma.vmem_to_hbm [thread:$0]  %s153_s8, 64, %s381_s2, [#allocation4]  }
 0x111   :  { %s264_s21 = scalar_lea.vmem %s346_s10, 64  ;;  %p269_p11 = scmp.lt.s32.totalorder %s346_s10, %s346_s10 }
 0x112   :  { %p265_p10 = scmp.ne.s32.totalorder %s346_s10, %s264_s21  ;;  %p270_p12 = scmp.lt.s32.totalorder %s264_s21, %s264_s21 }
 0x114   :  { %p271_p13 = por %p270_p12, %p269_p11 }
 0x116   :  { %p272_p0 = pnand %p271_p13, %p265_p10 }
 0x118   :  { %275 = shalt.err (!%p272_p0)
}
 0x119   :  { %s276_s24 = scalar_lea.hbm %s382_s3, 64 }
 0x11a   :  { %p277_p1 = scmp.ne.s32.totalorder %s382_s3, %s276_s24  ;;  %p280_p2 = scmp.lt.u32.totalorder %s276_s24, %s382_s3 }
 0x11c   :  { %p282_p3 = pnand %p280_p2, %p277_p1 }
 0x11e   :  { %285 = shalt.err (!%p282_p3)
}
 0x11f   :  { %165 = dma.vmem_to_hbm [thread:$0]  %s346_s10, 64, %s382_s3, [#allocation9]  }
 0x120   :  { %290 = dma.done.wait [#allocation4], 64  }
 0x121   :  { %291 = vsyncadd [#allocation4], 4294967232 }
 0x122   :  { %292 = dma.done.wait [#allocation9], 64  }
 0x123   :  { %293 = vsyncadd [#allocation9], 4294967232 }
 0x124   :  { %172 = vsyncpa [#allocation3], 1 }
 0x125   :  { %173 = vsyncpa [#allocation6], 1 }
 0x126   :  { %174 = vsyncpa [#allocation4], 1 }
 0x127   :  { %175 = vsyncpa [#allocation9], 1 }

</bundles_post_ra>
